<compile_context>
chip_gen: v7x
topology: tpu7x:2x2x1
jax: 0.10.0
libtpu: 0.0.40
codegen_flags: <defaults>
</compile_context>

<pallas_src>
import jax
import jax.numpy as jnp
from jax import lax
from jax.experimental import pallas as pl
from jax.experimental.pallas import tpu as pltpu


_NEG_SLOPE = 0.01  # PyTorch nn.LeakyReLU default negative_slope


def _make_kernel(precision):
    def kernel(x_ref, w_ref, b_ref, o_ref):
        # x_ref: (C_in, tsp)  w_ref: (tile_cout, C_in)  b_ref: (tile_cout, 1)  o_ref: (tile_cout, tsp)
        y = jnp.dot(w_ref[...], x_ref[...],
                    preferred_element_type=jnp.float32, precision=precision)
        y = y + b_ref[...]                        # bias broadcast over the lane (spatial) axis
        y = jnp.where(y > 0, y, _NEG_SLOPE * y)   # LeakyReLU on the VPU in f32
        o_ref[...] = y.astype(o_ref.dtype)
    return kernel


def _vmem_budget_and_limit():
    """(tile-selection VMEM budget, vmem_limit_bytes) sized per TPU generation."""
    try:
        phys = int(getattr(pltpu.get_tpu_info(), "vmem_capacity_bytes", 64 << 20))
    except Exception:
        phys = 64 << 20  # conservative fallback: v7x has 64 MiB per TensorCore
    if phys >= (128 << 20):          # v5e / v6e: 128 MiB physical VMEM
        return 64 << 20, 96 << 20
    return 40 << 20, 48 << 20        # v7x: 64 MiB per TensorCore


def _choose_cout_tile(c_out, c_in, in_item, budget_bytes):
    """Full C_out when small; otherwise an MXU-friendly 256/128 tile so the double-buffered
    weight block stays a small fraction of the VMEM budget."""
    if c_out <= 256:
        return c_out
    t = 256  # matches v6e/v7x MXU tile; lowers to 2x128 passes on v5e, still fine
    while t > 128 and 2 * t * c_in * in_item > budget_bytes // 4:
        t //= 2
    return t


def _choose_spatial_tile(hw, c_in, tile_cout, in_item, out_item,
                         budget_bytes, target_bytes=4 << 20):
    """Largest lane-dense (multiple-of-128) spatial tile that (a) moves ~target_bytes of HBM
    traffic per grid step and (b) fits VMEM including double-buffered x/out blocks, the f32
    matmul intermediate, and the double-buffered weight/bias slabs."""
    if hw <= 128:
        return hw  # full-extent block is always legal
    traffic_per_col = c_in * in_item + tile_cout * out_item          # HBM bytes per column
    vmem_per_col = 2 * c_in * in_item + 2 * tile_cout * out_item + 4 * tile_cout  # + f32 temp
    fixed = 2 * (tile_cout * c_in * in_item + tile_cout * 4)         # weight + bias, 2 bufs
    avail = budget_bytes - fixed
    if avail < 128 * vmem_per_col:
        # Weight slab (nearly) exhausts the budget; fall back to the minimal lane-dense tile.
        return 128
    tsp = min(32768,
              max(128, target_bytes // traffic_per_col),
              avail // vmem_per_col,
              hw)
    return max(128, (int(tsp) // 128) * 128)


def pointwise_conv_forward(x_nchw, weight, bias):
    """x_nchw: (N, C_in, H, W); weight: (C_out, C_in) or (C_out, C_in, 1, 1); bias: (C_out,)."""
    N, C_in, H, W = x_nchw.shape
    C_out = weight.shape[0]
    HW = H * W
    out_dtype = x_nchw.dtype

    # --- explicit MXU precision policy -------------------------------------------------------
    compute_bound = (C_in >= 512 and C_out >= 512)
    if x_nchw.dtype == jnp.float32 and compute_bound:
        mxu_dtype, precision = jnp.bfloat16, None                      # bf16 operands, f32 acc
    elif x_nchw.dtype == jnp.float32:
        mxu_dtype, precision = jnp.float32, lax.Precision.HIGHEST      # mem-bound: f32 is free
    else:
        mxu_dtype, precision = x_nchw.dtype, None

    # --- layout: keep NCHW free views; fold batch into lanes only when HW is tiny ------------
    flatten_batch = (HW < 128) and (N > 1)
    if flatten_batch:
        x3d = jnp.transpose(x_nchw, (1, 0, 2, 3)).reshape(1, C_in, N * HW)
        n_eff, hw_eff = 1, N * HW
    else:
        x3d = x_nchw.reshape(N, C_in, HW)                              # free view, stays NCHW
        n_eff, hw_eff = N, HW
    x3d = x3d.astype(mxu_dtype)
    w = weight.reshape(C_out, C_in).astype(mxu_dtype)
    b2d = bias.reshape(C_out, 1).astype(jnp.float32)

    in_item = jnp.dtype(mxu_dtype).itemsize
    out_item = jnp.dtype(out_dtype).itemsize

    budget, vmem_limit = _vmem_budget_and_limit()
    tile_cout = _choose_cout_tile(C_out, C_in, in_item, budget)
    tsp = _choose_spatial_tile(hw_eff, C_in, tile_cout, in_item, out_item, budget)

    # Guarantee >= 2 grid steps when splittable so v7x's two TensorCores both get work.
    n_co = pl.cdiv(C_out, tile_cout)
    while n_eff * pl.cdiv(hw_eff, tsp) * n_co < 2 and tsp > 128:
        tsp = max(128, ((tsp // 2) // 128) * 128)

    grid = (n_eff, pl.cdiv(hw_eff, tsp), n_co)

    cost = pl.CostEstimate(
        flops=2 * N * HW * C_in * C_out,
        transcendentals=0,
        bytes_accessed=(N * HW * C_in + C_in * C_out) * in_item
                       + C_out * 4 + N * HW * C_out * out_item,
    )

    # TODO(synk): sweep pipeline_mode=pl.Buffered(3) on the x BlockSpec for tiny-block shapes
    # with VMEM headroom (exposed DMA latency behind the short matmul+VPU epilogue).
    out3d = pl.pallas_call(
        _make_kernel(precision),
        out_shape=jax.ShapeDtypeStruct((n_eff, C_out, hw_eff), out_dtype),
        grid_spec=pltpu.PrefetchScalarGridSpec(
            num_scalar_prefetch=0,
            grid=grid,
            in_specs=[
                # x block index is invariant over the innermost (c_out) axis -> stays resident.
                pl.BlockSpec((pl.Squeezed(), C_in, tsp), lambda n, s, co: (n, 0, s)),
                pl.BlockSpec((tile_cout, C_in), lambda n, s, co: (co, 0)),
                pl.BlockSpec((tile_cout, 1), lambda n, s, co: (co, 0)),
            ],
            out_specs=pl.BlockSpec((pl.Squeezed(), tile_cout, tsp),
                                   lambda n, s, co: (n, co, s)),
        ),
        compiler_params=pltpu.CompilerParams(
            dimension_semantics=("parallel", "parallel", "parallel"),
            vmem_limit_bytes=vmem_limit,
        ),
        cost_estimate=cost,
    )(x3d, w, b2d)

    if flatten_batch:
        return out3d.reshape(C_out, N, H, W).transpose(1, 0, 2, 3)
    return out3d.reshape(N, C_out, H, W)  # free view, already NCHW


def _reference(x_nchw, weight, bias):
    # Pure-JAX reference: 1x1 conv == einsum over channel dim, + bias, LeakyReLU
    y = jnp.einsum("nchw,oc->nohw", x_nchw.astype(jnp.float32),
                   weight.reshape(weight.shape[0], -1).astype(jnp.float32))
    y = y + bias.reshape(1, -1, 1, 1).astype(jnp.float32)
    return jnp.where(y > 0, y, _NEG_SLOPE * y).astype(x_nchw.dtype)


if __name__ == "__main__":
    key = jax.random.PRNGKey(0)
    k_x, k_w, k_b = jax.random.split(key, 3)

    N, C_in, C_out, Hs, Ws = 2, 4, 8, 16, 16

    x = jax.random.normal(k_x, (N, C_in, Hs, Ws), dtype=jnp.float32)
    # Deterministic init mimicking Conv2d default scale (fan_in = C_in * 1 * 1)
    bound = 1.0 / (C_in ** 0.5)
    weight = jax.random.uniform(k_w, (C_out, C_in), jnp.float32, -bound, bound)
    bias = jax.random.uniform(k_b, (C_out,), jnp.float32, -bound, bound)

    out = pointwise_conv_forward(x, weight, bias)
    out = jax.block_until_ready(out)

    ref = _reference(x, weight, bias)
    assert out.shape == (N, C_out, Hs, Ws)
    assert jnp.allclose(out, ref, atol=1e-5, rtol=1e-5)

    print("KERNEL_OK")
</pallas_src>

<mosaic_0001>
module attributes {stable_mosaic.version = 11 : i64} {
  func.func @kernel(%arg0: i32, %arg1: i32, %arg2: i32, %arg3: memref<1x4x256xf32, #tpu.memory_space<vmem>>, %arg4: memref<8x4xf32, #tpu.memory_space<vmem>>, %arg5: memref<8x1xf32, #tpu.memory_space<vmem>>, %arg6: memref<1x8x256xf32, #tpu.memory_space<vmem>>) attributes {dimension_semantics = [#tpu.dimension_semantics<parallel>, #tpu.dimension_semantics<parallel>, #tpu.dimension_semantics<parallel>], iteration_bounds = array<i64: 2, 1, 1>, scalar_prefetch = 0 : i64, scratch_operands = 0 : i64, tpu.core_type = #tpu.core_type<tc>, window_params = [{transform_indices = @transform_0, window_bounds = array<i64: 1, 4, 256>}, {transform_indices = @transform_1, window_bounds = array<i64: 8, 4>}, {transform_indices = @transform_2, window_bounds = array<i64: 8, 1>}, {transform_indices = @transform_3, window_bounds = array<i64: 1, 8, 256>}]} {
    %c0 = arith.constant 0 : index
    %c0_0 = arith.constant 0 : index
    %0 = vector.load %arg4[%c0, %c0_0] : memref<8x4xf32, #tpu.memory_space<vmem>>, vector<8x4xf32>
    %c0_1 = arith.constant 0 : index
    %c0_2 = arith.constant 0 : index
    %c0_3 = arith.constant 0 : index
    %1 = vector.load %arg3[%c0_1, %c0_2, %c0_3] : memref<1x4x256xf32, #tpu.memory_space<vmem>>, vector<1x4x256xf32>
    %2 = vector.shape_cast %1 : vector<1x4x256xf32> to vector<4x256xf32>
    %cst = arith.constant dense<0.000000e+00> : vector<8x256xf32>
    %3 = tpu.matmul %0, %2, %cst {dimension_numbers = #tpu.dot_dimension_numbers<[1], [0], [0], [1], [0, 0, 1, 1], [], []>, precision = #tpu.contract_precision<fp32>} : vector<8x4xf32>, vector<4x256xf32>, vector<8x256xf32> -> vector<8x256xf32>
    %c0_4 = arith.constant 0 : index
    %c0_5 = arith.constant 0 : index
    %4 = vector.load %arg5[%c0_4, %c0_5] : memref<8x1xf32, #tpu.memory_space<vmem>>, vector<8x1xf32>
    %5 = vector.broadcast %4 : vector<8x1xf32> to vector<8x256xf32>
    %6 = arith.addf %3, %5 : vector<8x256xf32>
    %cst_6 = arith.constant 0.000000e+00 : f32
    %7 = vector.broadcast %cst_6 : f32 to vector<8x256xf32>
    %8 = arith.cmpf ogt, %6, %7 : vector<8x256xf32>
    %cst_7 = arith.constant 0.00999999977 : f32
    %9 = vector.broadcast %cst_7 : f32 to vector<8x256xf32>
    %10 = arith.mulf %9, %6 : vector<8x256xf32>
    %11 = arith.select %8, %6, %10 : vector<8x256xi1>, vector<8x256xf32>
    %c0_8 = arith.constant 0 : index
    %c0_9 = arith.constant 0 : index
    %c0_10 = arith.constant 0 : index
    %12 = vector.load %arg6[%c0_8, %c0_9, %c0_10] : memref<1x8x256xf32, #tpu.memory_space<vmem>>, vector<1x8x256xf32>
    %13 = vector.shape_cast %12 : vector<1x8x256xf32> to vector<8x256xf32>
    %14 = vector.shape_cast %11 : vector<8x256xf32> to vector<1x8x256xf32>
    tpu.vector_store %arg6[%c0_8, %c0_9, %c0_10], %14 {strides = array<i32>} : memref<1x8x256xf32, #tpu.memory_space<vmem>>, vector<1x8x256xf32>,
    return
  }
  func.func @transform_0(%arg0: i32, %arg1: i32, %arg2: i32) -> (i32, i32, i32) {
    %c0_i32 = arith.constant 0 : i32
    %c0_i32_0 = arith.constant 0 : i32
    return %arg0, %c0_i32, %arg1 : i32, i32, i32
  }
  func.func @transform_1(%arg0: i32, %arg1: i32, %arg2: i32) -> (i32, i32) {
    %c0_i32 = arith.constant 0 : i32
    %c0_i32_0 = arith.constant 0 : i32
    return %arg2, %c0_i32 : i32, i32
  }
  func.func @transform_2(%arg0: i32, %arg1: i32, %arg2: i32) -> (i32, i32) {
    %c0_i32 = arith.constant 0 : i32
    %c0_i32_0 = arith.constant 0 : i32
    return %arg2, %c0_i32 : i32, i32
  }
  func.func @transform_3(%arg0: i32, %arg1: i32, %arg2: i32) -> (i32, i32, i32) {
    %c0_i32 = arith.constant 0 : i32
    return %arg0, %arg2, %arg1 : i32, i32, i32
  }
}

</mosaic_0001>

<bundles_post_ra>
// kernel: tpu_custom_call.1
= control target key start
LH: loop header
LB: loop body
LE: loop exit
PB: predicated region body
PF: predicated region fallthrough
CT: control target
= control target key end

     0   :  { %8 = vsyncpa [#allocation3], 0  ;;  %s1174_s0 = inlined_call_operand.vmem [shape: f32[2,4,256], index: 0, kind: input, shape index: {}]   ;;  %s1175_s1 = inlined_call_operand.vmem [shape: f32[8,4], index: 1, kind: input, shape index: {}]   ;;  %s1176_s2 = inlined_call_operand.vmem [shape: f32[8,1], index: 2, kind: input, shape index: {}]   ;;  %s1177_s3 = inlined_call_operand.hbm [shape: f32[2,8,256], index: 3, kind: output, shape index: {}]  }
   0x1   :  { %10 = vsyncpa [#allocation3 + $0x1], 0  ;;  %s1056_s12 = smov 0   ;;  %s1058_s13 = smov 0  }
   0x2   :  { %s1060_s14 = smov 0   ;;  %s1062_s15 = smov 0  }
   0x3   :  { %s1064_s16 = smov 0   ;;  %s1066_s17 = smov 0  }
   0x4 LB: > { %s865_s18 = sadd.s32 4294967295, %s1031_s17   ;;  %s866_s19 = sadd.s32 4294967294, %s1031_s17   ;;  %s1031_s17 = sphi %s1066_s17, %s16_s17   ;;  %s1027_s16 = sphi %s1064_s16, %s1184_s16   ;;  %s1023_s15 = sphi %s1062_s15, %s1183_s15   ;;  %s1019_s14 = sphi %s1060_s14, %s1182_s14   ;;  %s1015_s13 = sphi %s1058_s13, %s1181_s13   ;;  %s1011_s12 = sphi %s1056_s12, %s1180_s12  }
   0x5   : > { %s35_s20 = sadd.s32 1, %s1027_s16  ;;  %s126_s21 = sadd.s32 1, %s1019_s14 }
   0x6   : > { %p37_p0 = scmp.ge.s32.totalorder %s35_s20, 2  ;;  %p136_p1 = scmp.ne.s32.totalorder %s1019_s14, %s1015_s13 }
   0x7   : > { %p137_p2 = scmp.eq.s32.totalorder %s865_s18, 1  ;;  %p142_p3 = scmp.ne.s32.totalorder %s1015_s13, %s1011_s12 }
   0x8   : > { %s1186_s20 = smov (%p37_p0, %s35_s20), 0  ;;  %p143_p5 = scmp.eq.s32.totalorder %s866_s19, 1 }
   0x9   : > { %p1096_p4 = por %p137_p2, %p136_p1  ;;  %s119_s23 = ssub.s32 %s1027_s16, %s1186_s20 }
   0xa   : > { %p871_p6 = scmp.ge.s32.totalorder %s1031_s17, 1  ;;  %p124_p7 = scmp.eq.s32.totalorder %s119_s23, 0 }
   0xb   : > { %p1103_p8 = por %p143_p5, %p142_p3  ;;  %p188_p9 = scmp.lt.s32.totalorder %s1031_s17, 3 }
   0xc   : > { %s1109_s25 = scalar_select %p124_p7, %s1019_s14, %s126_s21  }
   0xd   : > { %p189_p10 = pnand %p871_p6, %p188_p9 }
   0xe   : > { %p225_p11 = scmp.lt.s32.totalorder (!%p189_p10), %s1023_s15, 1  ;;  %v243_v0 = vld [vmem:[%s1175_s1] sm:$0xff] (!%p189_p10)  ;;  %vm253_vm0 = vcmask (!%p189_p10), 31744   ;;  %v1033_v1 = vmov (!%p189_p10), 0.0   ;;  %v1034_v5 = vmov (!%p189_p10), 0   ;;  %vm257_vm1 = vcmask (!%p189_p10), 1043456  }
   0xf   : > { %192 = sbr.rel (%p189_p10) target bundleno = 284 (0x11c), region = 32  ;;  %328 = vmatprep.mubr.f32.mxu1 (!%p189_p10), %v1033_v1  ;;  %565 = vmatprep.mubr.f32.mxu0 (!%p189_p10), %v1033_v1  ;;  %v255_v2 = vsel (!%p189_p10), %vm253_vm0, %v243_v0, 0  ;;  %v245_v3 = vld [vmem:[%s1176_s2] sm:$0xff] (!%p189_p10)  ;;  %s221_s8 = sand.u32 (!%p189_p10), 1, %s1015_s13  }
  0x10   : > { %v329_v4 = vand.u32 (!%p189_p10), 4294901760, %v255_v2  ;;  %951 = vset.pattern.permute.xlu0 (!%p189_p10), %v1034_v5  ;;  %s872_s9 = sshll.u32 (!%p189_p10), %s221_s8, 4  ;;  %s881_s10 = sshll.u32 (!%p189_p10), %s1023_s15, 8 }
  0x11   : > { %248 = vperm.xlu0 (!%p189_p10), %951, %v245_v3   ;;  %s223_s11 = scalar_lea.vmem (!%p189_p10), [#allocation2], %s872_s9  ;;  %s1127_s23 = scalar_lea.hbm (!%p189_p10), %s1177_s3, %s881_s10 }
  0x12   : > { %v330_v6 = vsub.f32 (!%p189_p10), %v255_v2, %v329_v4  ;;  %s754_s18 = sshll.u32 (!%p189_p10), %s223_s11, 4  ;;  %s1035_s27 = smov (!%p189_p10), [#allocation2]   ;;  %s1129_s18 = int_to_ptr.vmem [resolvable:$true] %s754_s18 }
  0x13   : > { %s953_s26 = scalar_lea.vmem (!%p189_p10), %s1129_s18, 256  ;;  %s957_s28 = sshll.u32 (!%p189_p10), %s1035_s27, 4  ;;  %s958_s28 = int_to_ptr.vmem [resolvable:$false] %s957_s28 }
  0x14   : > { %v331_v8 = vand.u32 (!%p189_p10), 4294901760, %v330_v6  ;;  %p954_p12 = scmp.ne.s32.totalorder (!%p189_p10), %s1129_s18, %s953_s26  ;;  %s959_s29 = scalar_lea.vmem (!%p189_p10), %s958_s28, 512 }
  0x15   : > { %p960_p1 = scmp.lt.s32.totalorder (!%p189_p10), %s1129_s18, %s958_s28  ;;  %p961_p2 = scmp.lt.s32.totalorder (!%p189_p10), %s959_s29, %s953_s26 }
  0x16   : > { %s226_s30 = scalar_select %p225_p11, %s1023_s15, 1  ;;  %v332_v12 = vsub.f32 %v330_v6, %v331_v8 }
  0x17   : > { %s736_s15 = scalar_lea.sflag [#allocation3], %s221_s8  ;;  %p955_p13 = pnand %p954_p12, %p1096_p4 }
  0x18   : > { %s880_s4 = sshll.u32 %s226_s30, 3  ;;  %v333_v16 = vand.u32 4294901760, %v332_v12  ;;  %p962_p3 = por %p961_p2, %p960_p1 }
  0x19   : > { %s232_s7 = scalar_lea.vmem %s1174_s0, %s880_s4  ;;  %p956_p0 = pneg %p955_p13 }
  0x1a   : > { %v244_v7 = vld [vmem:[%s232_s7] sm:$0xff] }
  0x1b   : > { %v252_v9 = vcombine.high %v244_v7, %v244_v7  ;;  %v258_v10 = vsel %vm257_vm1, %v244_v7, 0  ;;  %p963_p5 = pnand %p962_p3, %p956_p0 }
  0x1c   : > { %v264_v11 = vand.u32 4294901760, %v258_v10 }
  0x1d   : > { %v260_v13 = vsel %vm257_vm1, %v252_v9, 0 }
  0x1e   : > { %v262_v14 = vand.u32 4294901760, %v260_v13  ;;  %v347_v15 = vsub.f32 %v258_v10, %v264_v11 }
  0x20   : > { %263 = vmatprep.subr.mxu1 %v262_v14  ;;  %500 = vmatprep.subr.mxu0 %v262_v14  ;;  %v341_v17 = vsub.f32 %v260_v13, %v262_v14  ;;  %v348_v18 = vand.u32 4294901760, %v347_v15 }
  0x21   : > { %265 = vmatpush1.msra.mxu1 %v264_v11  ;;  %502 = vmatpush1.msra.mxu0 %v264_v11 }
  0x22   : > { %334 = vmatmul.mubr.f32.vlgmr.msra.gmra.mrb[0].mxu1 %v333_v16  ;;  %569 = vmatmul.mubr.f32.vlgmr.msra.gmra.mrb[0].mxu0 %v331_v8  ;;  %v342_v19 = vand.u32 4294901760, %v341_v17  ;;  %v349_v20 = vsub.f32 %v347_v15, %v348_v18 }
  0x23   : > { %414 = vmatprep.mubr.f32.mxu1 %v1033_v1  ;;  %645 = vmatprep.mubr.f32.mxu0 %v1033_v1 }
  0x24   : > { %v343_v21 = vsub.f32 %v341_v17, %v342_v19  ;;  %578 = vmatprep.subr.mxu0 %v342_v19  ;;  %v350_v22 = vand.u32 4294901760, %v349_v20 }
  0x25   : > { %582 = vmatpush1.msra.mxu0 %v348_v18 }
  0x26   : > { %v344_v23 = vand.u32 4294901760, %v343_v21  ;;  %654 = vmatprep.subr.mxu0 %v262_v14 }
  0x28   : > { %345 = vmatprep.subr.mxu1 %v344_v23 }
  0x29   : > { %351 = vmatpush1.msra.mxu1 %v350_v22 }
  0x2a   : > { %416 = vmatmul.mubr.f32.vlgmr.msra.gmra.mrb[0].mxu1 %v329_v4  ;;  %647 = vmatmul.mubr.f32.vlgmr.msra.gmra.mrb[0].mxu0 %v329_v4 }
  0x2b   : > { %424 = vmatprep.subr.mxu1 %v341_v17  ;;  %490 = vmatprep.mubr.f32.mxu1 %v1033_v1 }
  0x2c   : > { %427 = vmatpush1.msra.mxu1 %v347_v15  ;;  %656 = vmatpush1.msra.mxu0 %v264_v11 }
  0x2d   : > { %719 = vmatprep.mubr.f32.mxu0 %v1033_v1 }
  0x32   : > { %493 = vmatmul.mubr.f32.vlgmr.msra.gmra.mrb[0].mxu1 %v330_v6  ;;  %721 = vmatmul.mubr.f32.vlgmr.msra.gmra.mrb[0].mxu0 %v329_v4 }
  0x90   : > { %v249_v24 = vpop.permute.xlu0 %248 }
 0x105   : > { %v494_v25 = vpop.f32.mrb[0].mxu1  ;;  %v722_v26 = vpop.f32.mrb[0].mxu0 }
 0x106   : > { %v882_v27 = vadd.f32 %v494_v25, %v249_v24  ;;  %v496_v28 = vpop.f32.mrb[1].mxu1  ;;  %v724_v29 = vpop.f32.mrb[1].mxu0 }
 0x107   : > { %v884_v30 = vadd.f32 %v496_v28, %v249_v24 }
 0x108   : > { %v883_v31 = vadd.f32 %v882_v27, %v722_v26 }
 0x109   : > { %v885_v32 = vadd.f32 %v884_v30, %v724_v29 }
 0x10a   : > { %vm727_vm2 = vcmp.gt.f32.partialorder %v883_v31, 0.0  ;;  %v729_v33 = vmul.f32 0.01, %v883_v31 }
 0x10b   : > { %vm728_vm3 = vcmp.gt.f32.partialorder %v885_v32, 0.0  ;;  %v730_v34 = vmul.f32 0.01, %v885_v32 }
 0x10c   : > { %v731_v35 = vsel %vm727_vm2, %v883_v31, %v729_v33 }
 0x10d   : > { %v732_v36 = vsel %vm728_vm3, %v885_v32, %v730_v34  ;;  %733 = vst [vmem:[%s223_s11] sm:$0xff] %v731_v35 }
 0x10e   : > { %734 = vst [vmem:[%s223_s11 + $0x8] sm:$0xff] %v732_v36 }
 0x10f   : > { %966 = shalt.err (!%p963_p5)
}
 0x110   : > { %s967_s30 = scalar_lea.hbm %s1127_s23, 256  ;;  %s971_s6 = scalar_lea.hbm %s1177_s3, 512 }
 0x111   : > { %p968_p6 = scmp.ne.s32.totalorder %s1127_s23, %s967_s30  ;;  %p972_p10 = scmp.lt.u32.totalorder %s1127_s23, %s1177_s3 }
 0x112   : > { %p973_p11 = scmp.lt.u32.totalorder %s971_s6, %s967_s30  ;;  %p975_p13 = scmp.lt.u32.totalorder %s967_s30, %s1127_s23 }
 0x113   : > { %p969_p7 = pnand %p968_p6, %p1096_p4 }
 0x114   : > { %p974_p12 = por %p973_p11, %p972_p10 }
 0x115   : > { %p970_p9 = pneg %p969_p7 }
 0x116   : > { %p976_p0 = por %p975_p13, %p974_p12 }
 0x118   : > { %p977_p1 = pnand %p976_p0, %p970_p9 }
 0x11a   : > { %980 = shalt.err (!%p977_p1)
}
 0x11b   : > { %894 = dma.vmem_to_hbm [thread:$0]  (%p1096_p4), %s1129_s18, 256, %s1127_s23, %s736_s15  }
 0x11c PF: > { %p900_p2 = scmp.ge.s32.totalorder %s1031_s17, 2  ;;  %s766_s9 = sand.u32 1, %s1011_s12  }
 0x11d   : > { %s767_s10 = scalar_lea.sflag [#allocation3], %s766_s9 }
 0x11e   : > { %p897_p3 = pnand %p900_p2, %p1103_p8 }
 0x120   : > { %1006 = dma.done.wait (!%p897_p3), %s767_s10, 256  }
 0x121   : > { %1008 = vsyncadd (!%p897_p3), %s767_s10, 4294967040  ;;  %s16_s17 = sadd.s32 1, %s1031_s17   ;;  %s1180_s12 = smov %s1015_s13 }
 0x122   : > { %p13_p5 = scmp.ge.s32.totalorder %s16_s17, 4   ;;  %s1181_s13 = smov %s1019_s14 }
 0x123   : > { %s1182_s14 = smov %s1109_s25  ;;  %s1183_s15 = smov %s1027_s16 }
 0x124   : > { %s1184_s16 = smov %s1186_s20  ;;  %15 = sbr.rel (!%p13_p5) target bundleno = 4 (0x4), region = 73 }
 0x12b   :  { %772 = vsyncpa [#allocation3], 1 }
 0x12c   :  { %774 = vsyncpa [#allocation3 + $0x1], 1 }

</bundles_post_ra>
